<compile_context>
chip_gen: v6e
topology: v6e:2x2x1
jax: 0.10.0
libtpu: 0.0.40
codegen_flags: <defaults>
</compile_context>

<pallas_src>
import functools

import jax
import jax.numpy as jnp
from jax.experimental import pallas as pl
from jax.experimental.pallas import tpu as pltpu

_LANE = 128


def _rmsnorm_kernel(x_ref, g_ref, o_ref, *, eps, fn):
    # x_ref: (TB, C, TILE_HW) block; g_ref: (1, C, 128) pre-scaled gain.
    x = x_ref[...].astype(jnp.float32)
    g = g_ref[...].astype(jnp.float32)[:, :, :1]            # (1, C, 1)

    # F.normalize(x, dim=1) * g * sqrt(C)
    #   == x * rsqrt(max(sum_c x^2, eps^2)) * g_scaled   (exact)
    sq_sum = jnp.sum(x * x, axis=1, keepdims=True)           # (TB, 1, TILE_HW)
    inv = jax.lax.rsqrt(jnp.maximum(sq_sum, eps * eps))       # EUP rsqrt
    y = x * inv * g

    if fn is not None:
        y = fn(y)                                             # fused elementwise fn

    o_ref[...] = y.astype(o_ref.dtype)


def _divisors_desc(n):
    ds = set()
    i = 1
    while i * i <= n:
        if n % i == 0:
            ds.add(i)
            ds.add(n // i)
        i += 1
    return sorted(ds, reverse=True)


def _vmem_capacity_bytes():
    try:
        return int(pltpu.get_tpu_info().vmem_capacity_bytes)
    except Exception:
        return 64 * 1024 * 1024  # v7x-safe fallback, works on all generations


def _plan_tiles(B, C, HW_p, itemsize):
    """Pick (TB, TILE_HW, vmem_limit_bytes) for block (TB, C, TILE_HW)."""
    vmem_cap = _vmem_capacity_bytes()
    tile_budget = int(vmem_cap * 0.40)       # share reserved for pipelined blocks
    vmem_limit = int(vmem_cap * 0.90)

    # Sublane-packing-aware channel padding (f32: 8, bf16: 16, int8: 32).
    pad = max(8, 32 // max(1, itemsize))
    padded_c = -(-C // pad) * pad

    # Bytes per element of block: double-buffered in + out blocks in the input
    # dtype, plus f32 compute intermediates inside the kernel.
    per_elem = 4 * itemsize + 8

    def block_bytes(tb, tile_hw):
        return per_elem * tb * padded_c * tile_hw

    # Largest lane-dense spatial tile (multiple of 128, dividing HW_p) that
    # fits the budget for a single batch element.
    n_lane_blocks = HW_p // _LANE
    tile_hw = _LANE
    for d in _divisors_desc(n_lane_blocks):
        if block_bytes(1, d * _LANE) <= tile_budget:
            tile_hw = d * _LANE
            break

    # Fold batch into the block while it still fits.
    tb = 1
    for d in _divisors_desc(B):
        if block_bytes(d, tile_hw) <= tile_budget:
            tb = d
            break

    # Keep at least 2 grid steps when possible so both v7x TensorCores get
    # work (no-op on single-TC v5e/v6e).
    if (B // tb) * (HW_p // tile_hw) < 2:
        if tb > 1:
            for d in _divisors_desc(tb):
                if d < tb:
                    tb = d
                    break
        elif tile_hw >= 2 * _LANE:
            for d in _divisors_desc(tile_hw // _LANE):
                if d * _LANE < tile_hw:
                    tile_hw = d * _LANE
                    break

    return tb, tile_hw, vmem_limit


def rmsnorm_pallas(x_nchw, g, *, eps=1e-12, fn=None):
    """RMSNorm over the channel axis of an NCHW tensor (Pallas TPU kernel).

    If `fn` is an elementwise JAX callable it is fused into the kernel before
    the store (saves one full HBM round-trip for the PreNorm block).  Only
    elementwise fns may be fused — anything that mixes spatial or channel
    positions must be applied outside the kernel.
    """
    B, C, H, W = x_nchw.shape
    HW = H * W
    scale = float(C) ** 0.5

    x3 = x_nchw.reshape(B, C, HW)

    # Pad the flattened spatial axis to a multiple of 128: keeps every store
    # lane-dense / unmasked.  Zero columns normalize to zero and are sliced
    # off afterwards.
    HW_p = -(-HW // _LANE) * _LANE
    if HW_p != HW:
        x3 = jnp.pad(x3, ((0, 0), (0, 0), (0, HW_p - HW)))

    itemsize = jnp.dtype(x_nchw.dtype).itemsize
    tb, tile_hw, vmem_limit = _plan_tiles(B, C, HW_p, itemsize)

    # Pre-scaled, lane-aligned gain block: g * sqrt(C), broadcast to 128 lanes.
    g_scaled = jnp.broadcast_to(
        (g.reshape(1, C, 1) * scale).astype(jnp.float32), (1, C, _LANE))

    kernel = functools.partial(_rmsnorm_kernel, eps=eps, fn=fn)

    out = pl.pallas_call(
        kernel,
        out_shape=jax.ShapeDtypeStruct((B, C, HW_p), x_nchw.dtype),
        grid_spec=pltpu.PrefetchScalarGridSpec(
            num_scalar_prefetch=0,
            grid=(B // tb, HW_p // tile_hw),
            in_specs=[
                pl.BlockSpec((tb, C, tile_hw), lambda b, s: (b, 0, s)),
                pl.BlockSpec((1, C, _LANE), lambda b, s: (0, 0, 0)),
            ],
            out_specs=pl.BlockSpec((tb, C, tile_hw), lambda b, s: (b, 0, s)),
        ),
        compiler_params=pltpu.CompilerParams(
            dimension_semantics=("parallel", "parallel"),
            vmem_limit_bytes=vmem_limit),
    )(x3, g_scaled)

    if HW_p != HW:
        out = out[:, :, :HW]
    return out.reshape(B, C, H, W)


class PreNormPallas:
    """PreNorm: y = fn(RMSNorm(x)).

    The RMSNorm hot path runs in Pallas.  If `fuse_fn=True` and `fn` is an
    ELEMENTWISE JAX callable, it is fused into the kernel (one HBM round-trip
    instead of two).  For arbitrary sub-modules (convs, attention, ...) keep
    `fuse_fn=False`; fn is then applied to the Pallas output as ordinary JAX.
    """

    def __init__(self, dim, fn, *, fuse_fn=False):
        self.fn = fn
        self.fuse_fn = fuse_fn
        # nn.Parameter(torch.ones(1, dim, 1, 1)) — deterministic init (ones)
        self.g = jnp.ones((1, dim, 1, 1), dtype=jnp.float32)

    def __call__(self, x):
        if self.fuse_fn:
            return rmsnorm_pallas(x, self.g, fn=self.fn)
        return self.fn(rmsnorm_pallas(x, self.g))


def _reference(x, g, fn, dim):
    sq = jnp.sum(x * x, axis=1, keepdims=True)
    normed = x / jnp.maximum(jnp.sqrt(sq), 1e-12)
    return fn(normed * g * (dim ** 0.5))


if __name__ == "__main__":
    key = jax.random.PRNGKey(0)
    fn = jax.nn.gelu   # example elementwise fn (user-supplied in PyTorch)

    # --- Case 1: small NCHW, lane-divisible spatial extent ---
    B, C, H, W = 2, 4, 16, 16
    x = jax.random.normal(key, (B, C, H, W), dtype=jnp.float32)

    model = PreNormPallas(C, fn, fuse_fn=True)
    y_fused = jax.block_until_ready(model(x))

    model_unfused = PreNormPallas(C, fn, fuse_fn=False)
    y_unfused = jax.block_until_ready(model_unfused(x))

    ref = _reference(x, model.g, fn, C)
    assert y_fused.shape == (B, C, H, W)
    assert jnp.allclose(y_fused, ref, atol=1e-5, rtol=1e-5), "fused path mismatch"
    assert jnp.allclose(y_unfused, ref, atol=1e-5, rtol=1e-5), "unfused path mismatch"

    # --- Case 2: ragged spatial extent (exercises lane padding) ---
    B2, C2, H2, W2 = 1, 4, 5, 5
    x2 = jax.random.normal(jax.random.PRNGKey(1), (B2, C2, H2, W2),
                           dtype=jnp.float32)
    model2 = PreNormPallas(C2, fn, fuse_fn=True)
    y2 = jax.block_until_ready(model2(x2))
    ref2 = _reference(x2, model2.g, fn, C2)
    assert y2.shape == (B2, C2, H2, W2)
    assert jnp.allclose(y2, ref2, atol=1e-5, rtol=1e-5), "padded path mismatch"

    print("KERNEL_OK")
</pallas_src>

<mosaic_0001>
module attributes {stable_mosaic.version = 11 : i64} {
  func.func @_rmsnorm_kernel(%arg0: i32, %arg1: i32, %arg2: memref<1x4x256xf32, #tpu.memory_space<vmem>>, %arg3: memref<1x4x128xf32, #tpu.memory_space<vmem>>, %arg4: memref<1x4x256xf32, #tpu.memory_space<vmem>>) attributes {dimension_semantics = [#tpu.dimension_semantics<parallel>, #tpu.dimension_semantics<parallel>], iteration_bounds = array<i64: 2, 1>, scalar_prefetch = 0 : i64, scratch_operands = 0 : i64, tpu.core_type = #tpu.core_type<tc>, window_params = [{transform_indices = @transform_0, window_bounds = array<i64: 1, 4, 256>}, {pipeline_mode = #tpu.pipeline_mode<synchronous>, transform_indices = @transform_1, window_bounds = array<i64: 1, 4, 128>}, {transform_indices = @transform_2, window_bounds = array<i64: 1, 4, 256>}]} {
    %c0 = arith.constant 0 : index
    %c0_0 = arith.constant 0 : index
    %c0_1 = arith.constant 0 : index
    %0 = vector.load %arg2[%c0, %c0_0, %c0_1] : memref<1x4x256xf32, #tpu.memory_space<vmem>>, vector<1x4x256xf32>
    %c0_2 = arith.constant 0 : index
    %c0_3 = arith.constant 0 : index
    %c0_4 = arith.constant 0 : index
    %1 = vector.load %arg3[%c0_2, %c0_3, %c0_4] : memref<1x4x128xf32, #tpu.memory_space<vmem>>, vector<1x4x128xf32>
    %2 = vector.extract_strided_slice %1 {offsets = [0, 0, 0], sizes = [1, 4, 1], strides = [1, 1, 1]} : vector<1x4x128xf32> to vector<1x4x1xf32>
    %3 = arith.mulf %0, %0 : vector<1x4x256xf32>
    %cst = arith.constant dense<0.000000e+00> : vector<1x256xf32>
    %4 = vector.multi_reduction <add>, %3, %cst [1] : vector<1x4x256xf32> to vector<1x256xf32>
    %5 = vector.shape_cast %4 : vector<1x256xf32> to vector<1x1x256xf32>
    %cst_5 = arith.constant 1.000000e-24 : f32
    %6 = vector.broadcast %cst_5 : f32 to vector<1x1x256xf32>
    %7 = arith.maximumf %5, %6 : vector<1x1x256xf32>
    %8 = math.rsqrt %7 : vector<1x1x256xf32>
    %9 = vector.broadcast %8 : vector<1x1x256xf32> to vector<1x4x256xf32>
    %10 = arith.mulf %0, %9 : vector<1x4x256xf32>
    %11 = vector.broadcast %2 : vector<1x4x1xf32> to vector<1x4x256xf32>
    %12 = arith.mulf %10, %11 : vector<1x4x256xf32>
    %13 = arith.mulf %12, %12 : vector<1x4x256xf32>
    %14 = arith.mulf %12, %13 : vector<1x4x256xf32>
    %cst_6 = arith.constant 4.471500e-02 : f32
    %15 = vector.broadcast %cst_6 : f32 to vector<1x4x256xf32>
    %16 = arith.mulf %15, %14 : vector<1x4x256xf32>
    %17 = arith.addf %12, %16 : vector<1x4x256xf32>
    %cst_7 = arith.constant 0.797884583 : f32
    %18 = vector.broadcast %cst_7 : f32 to vector<1x4x256xf32>
    %19 = arith.mulf %18, %17 : vector<1x4x256xf32>
    %20 = math.tanh %19 : vector<1x4x256xf32>
    %cst_8 = arith.constant 1.000000e+00 : f32
    %21 = vector.broadcast %cst_8 : f32 to vector<1x4x256xf32>
    %22 = arith.addf %21, %20 : vector<1x4x256xf32>
    %cst_9 = arith.constant 5.000000e-01 : f32
    %23 = vector.broadcast %cst_9 : f32 to vector<1x4x256xf32>
    %24 = arith.mulf %23, %22 : vector<1x4x256xf32>
    %25 = arith.mulf %12, %24 : vector<1x4x256xf32>
    %c0_10 = arith.constant 0 : index
    %c0_11 = arith.constant 0 : index
    %c0_12 = arith.constant 0 : index
    %26 = vector.load %arg4[%c0_10, %c0_11, %c0_12] : memref<1x4x256xf32, #tpu.memory_space<vmem>>, vector<1x4x256xf32>
    tpu.vector_store %arg4[%c0_10, %c0_11, %c0_12], %25 {strides = array<i32>} : memref<1x4x256xf32, #tpu.memory_space<vmem>>, vector<1x4x256xf32>,
    return
  }
  func.func @transform_0(%arg0: i32, %arg1: i32) -> (i32, i32, i32) {
    %c0_i32 = arith.constant 0 : i32
    %c0_i32_0 = arith.constant 0 : i32
    return %arg0, %c0_i32, %arg1 : i32, i32, i32
  }
  func.func @transform_1(%arg0: i32, %arg1: i32) -> (i32, i32, i32) {
    %c0_i32 = arith.constant 0 : i32
    %c0_i32_0 = arith.constant 0 : i32
    %c0_i32_1 = arith.constant 0 : i32
    %c0_i32_2 = arith.constant 0 : i32
    return %c0_i32, %c0_i32_0, %c0_i32_1 : i32, i32, i32
  }
  func.func @transform_2(%arg0: i32, %arg1: i32) -> (i32, i32, i32) {
    %c0_i32 = arith.constant 0 : i32
    %c0_i32_0 = arith.constant 0 : i32
    return %arg0, %c0_i32, %arg1 : i32, i32, i32
  }
}

</mosaic_0001>

<bundles_post_ra>
// kernel: tpu_custom_call.1
= control target key start
LH: loop header
LB: loop body
LE: loop exit
PB: predicated region body
PF: predicated region fallthrough
CT: control target
= control target key end

     0   :  { %7 = vsyncpa [#allocation3], 0  ;;  %s783_s0 = inlined_call_operand.hbm [shape: f32[2,4,256], index: 0, kind: input, shape index: {}]   ;;  %s784_s1 = inlined_call_operand.hbm [shape: f32[1,4,128], index: 1, kind: input, shape index: {}]   ;;  %s785_s2 = inlined_call_operand.hbm [shape: f32[2,4,256], index: 2, kind: output, shape index: {}]  }
   0x1   :  { %9 = vsyncpa [#allocation3 + $0x1], 0 }
   0x2   :  { %10 = vsyncpa [#allocation6], 0 }
   0x3   :  { %11 = vsyncpa [#allocation4], 0 }
   0x4   :  { %13 = vsyncpa [#allocation4 + $0x1], 0  ;;  %s618_s9 = smov 0   ;;  %s620_s10 = smov 0  }
   0x5   :  { %s622_s11 = smov 0   ;;  %s624_s12 = smov 0  }
   0x6   :  { %s626_s13 = smov 0   ;;  %s628_s14 = smov 0  }
   0x7 LB: > { %s357_s15 = sadd.s32 4294967295, %s596_s14   ;;  %s358_s16 = sadd.s32 4294967294, %s596_s14   ;;  %s596_s14 = sphi %s628_s14, %s19_s14   ;;  %s592_s13 = sphi %s626_s13, %s802_s13   ;;  %s588_s12 = sphi %s624_s12, %s801_s12   ;;  %s584_s11 = sphi %s622_s11, %s800_s11   ;;  %s580_s10 = sphi %s620_s10, %s799_s10   ;;  %s576_s9 = sphi %s618_s9, %s798_s9  }
   0x8   : > { %p53_p0 = scmp.ne.s32.totalorder %s580_s10, %s576_s9  ;;  %p652_p1 = scmp.eq.s32.totalorder %s357_s15, 0 }
   0x9   : > { %p656_p2 = scmp.eq.s32.totalorder %s357_s15, 1  ;;  %p106_p3 = scmp.eq.s32.totalorder %s358_s16, 1 }
   0xa   : > { %p662_p4 = por %p652_p1, %p53_p0  ;;  %p359_p5 = scmp.ge.s32.totalorder %s596_s14, 1 }
   0xb   : > { %p667_p6 = por %p106_p3, %p53_p0  ;;  %p113_p7 = scmp.lt.s32.totalorder %s596_s14, 3 }
   0xc   : > { %s789_s19 = scalar_select %p662_p4, 1, 0 }
   0xd   : > { %s790_s20 = scalar_select %p667_p6, 1, 0 }
   0xe   : > { %p672_p8 = pnand %p359_p5, %p113_p7  ;;  %s598_s22 = smov [#allocation5]  }
   0xf   : > { %s126_s23 = sshll.u32 %s598_s22, 4  ;;  %s31_s25 = sadd.s32 1, %s592_s13  ;;  %s127_s23 = int_to_ptr.vmem [resolvable:$true] %s126_s23 }
  0x10   : > { %p384_p10 = pneg %p672_p8  ;;  %s40_s26 = sadd.s32 1, %s584_s11 }
  0x11   : > { %p33_p12 = scmp.ge.s32.totalorder %s31_s25, 2  ;;  %s469_s27 = scalar_lea.vmem %s127_s23, 64 }
  0x12   : > { %p681_p11 = pnand %p384_p10, %p652_p1  ;;  %p470_p0 = scmp.ne.s32.totalorder %s127_s23, %s469_s27 }
  0x13   : > { %p477_p7 = scmp.lt.s32.totalorder %s127_s23, %s127_s23  ;;  %p478_p6 = scmp.lt.s32.totalorder %s469_s27, %s469_s27 }
  0x14   : > { %p460_p13 = pneg %p681_p11 }
  0x15   : > { %p479_p9 = por %p478_p6, %p477_p7 }
  0x16   : > { %p472_p3 = pnand %p470_p0, %p460_p13 }
  0x18   : > { %p473_p5 = pneg %p472_p3 }
  0x1a   : > { %p480_p4 = pnand %p479_p9, %p473_p5 }
  0x1c   : > { %483 = shalt.err (!%p480_p4)
}
  0x1d   : > { %387 = dma.hbm_to_vmem [thread:$0]  (!%p681_p11), %s784_s1, 64, %s127_s23, [#allocation6]  }
  0x1e   : > { %s804_s25 = smov (%p33_p12, %s31_s25), 0  ;;  %p47_p6 = scmp.ne.s32.totalorder %s584_s11, %s580_s10 }
  0x1f   : > { %p48_p4 = scmp.eq.s32.totalorder %s596_s14, 0  ;;  %s35_s30 = ssub.s32 %s592_s13, %s804_s25 }
  0x20   : > { %p397_p9 = scmp.lt.s32.totalorder %s596_s14, 2  ;;  %p38_p10 = scmp.eq.s32.totalorder %s35_s30, 0 }
  0x21   : > { %p49_p13 = por %p48_p4, %p47_p6  ;;  %p704_p0 = por %p656_p2, %p47_p6 }
  0x22   : > { %s137_s4 = sand.u32 1, %s584_s11   ;;  %s374_s7 = sshll.u32 %s592_s13, 7 }
  0x23   : > { %s710_s5 = scalar_select %p38_p10, %s584_s11, %s40_s26  }
  0x24   : > { %s362_s6 = sshll.u32 %s137_s4, 3  ;;  %s149_s16 = scalar_lea.hbm %s783_s0, %s374_s7 }
  0x25   : > { %s141_s22 = scalar_lea.vmem [#allocation2], %s362_s6  ;;  %p716_p11 = pnand %p397_p9, %p49_p13 }
  0x26   : > { %s151_s23 = sshll.u32 %s141_s22, 4  ;;  %s138_s18 = scalar_lea.sflag [#allocation3], %s137_s4  ;;  %s152_s23 = int_to_ptr.vmem [resolvable:$true] %s151_s23 }
  0x27   : > { %p486_p2 = pneg %p716_p11  ;;  %s497_s27 = scalar_lea.vmem %s152_s23, 128 }
  0x28   : > { %p498_p12 = scmp.ne.s32.totalorder %s152_s23, %s497_s27  ;;  %s599_s26 = smov [#allocation2]  }
  0x29   : > { %s502_s28 = sshll.u32 %s599_s26, 4  ;;  %s503_s28 = int_to_ptr.vmem [resolvable:$false] %s502_s28 }
  0x2a   : > { %p500_p3 = pnand %p498_p12, %p486_p2  ;;  %s504_s29 = scalar_lea.vmem %s503_s28, 256 }
  0x2b   : > { %p505_p7 = scmp.lt.s32.totalorder %s152_s23, %s503_s28  ;;  %p506_p6 = scmp.lt.s32.totalorder %s504_s29, %s497_s27 }
  0x2c   : > { %p501_p5 = pneg %p500_p3 }
  0x2d   : > { %p507_p4 = por %p506_p6, %p505_p7 }
  0x2f   : > { %p508_p10 = pnand %p507_p4, %p501_p5 }
  0x31   : > { %511 = shalt.err (!%p508_p10)
}
  0x32   : > { %391 = dma.hbm_to_vmem [thread:$0]  (!%p716_p11), %s149_s16, 128, %s152_s23, %s138_s18  }
  0x33   : > { %160 = sbr.rel (%p672_p8) target bundleno = 232 (0xe8), region = 28  ;;  %s727_s30 = sand.u32 (!%p672_p8), 1, %s580_s10  }
  0x34   : > { %s366_s4 = sshll.u32 (!%p672_p8), %s727_s30, 3  ;;  %s163_s6 = scalar_lea.sflag (!%p672_p8), [#allocation3], %s727_s30 }
  0x35   : > { %s166_s7 = scalar_lea.vmem (!%p672_p8), [#allocation2], %s366_s4  ;;  %p795_p9 = scmp.ne.s32.totalorder (!%p672_p8), %s789_s19, 0 }
  0x38   : > { %563 = dma.done.wait (%p795_p9), %s163_s6, 128  }
  0x39   : > { %565 = vsyncadd (%p795_p9), %s163_s6, 4294967168 }
  0x3a   : > { %567 = dma.done.wait (%p652_p1), [#allocation6], 64  }
  0x3b   : > { %569 = vsyncadd (%p652_p1), [#allocation6], 4294967232  ;;  %v600_v0 = vmov 0   ;;  %v194_v1 = vld [vmem:[#allocation5] sm:$0xf]  ;;  %v193_v2 = vld [vmem:[%s166_s7] sm:$0xff]  ;;  %v230_v23 = vlaneseq }
  0x3c   : > { %451 = vset.pattern.permute.xlu0 %v600_v0  ;;  %v195_v3 = vmul.f32 %v193_v2, %v193_v2  ;;  %vm199_vm0 = vcmask 1043456   ;;  %v601_v21 = vmov 839922192   ;;  %s375_s17 = sshll.u32 %s588_s12, 7  ;;  %s190_s19 = scalar_lea.vmem [#allocation7], %s366_s4 }
  0x3d   : > { %225 = vperm.xlu0 %451, %v194_v1   ;;  %v228_v22 = vunpack.c.l.s4 %v601_v21  ;;  %v231_v27 = vshrl.u32 %v230_v23, 7  ;;  %s263_s21 = sshll.u32 %s190_s19, 4  ;;  %s261_s16 = scalar_lea.hbm %s785_s2, %s375_s17  ;;  %s264_s21 = int_to_ptr.vmem [resolvable:$true] %s263_s21 }
  0x3e   : > { %v197_v4 = vcombine.high %v195_v3, %v195_v3  ;;  %v200_v5 = vsel %vm199_vm0, %v195_v3, 0.0  ;;  %s247_s22 = scalar_lea.sflag [#allocation4], %s727_s30  ;;  %s512_s23 = scalar_lea.vmem %s264_s21, 128 }
  0x3f   : > { %v201_v7 = vrot.slane %v200_v5, 4  ;;  %v229_v26 = vunpack.c.0.s8 %v228_v22  ;;  %p513_p1 = scmp.ne.s32.totalorder %s264_s21, %s512_s23  ;;  %s602_s24 = smov [#allocation7]  }
  0x40   : > { %v207_v6 = vsel %vm199_vm0, %v197_v4, 0.0  ;;  %s516_s18 = sshll.u32 %s602_s24, 4  ;;  %s517_s18 = int_to_ptr.vmem [resolvable:$false] %s516_s18 }
  0x41   : > { %v208_v8 = vrot.slane %v207_v6, 4  ;;  %v202_v9 = vadd.f32 %v201_v7, %v200_v5  ;;  %v232_v29 = vsub.s32 %v229_v26, %v231_v27  ;;  %p514_p8 = pnand %p513_p1, %p704_p0  ;;  %s518_s12 = scalar_lea.vmem %s517_s18, 256 }
  0x42   : > { %p519_p11 = scmp.lt.s32.totalorder %s264_s21, %s517_s18  ;;  %p520_p2 = scmp.lt.s32.totalorder %s518_s12, %s512_s23 }
  0x43   : > { %v209_v10 = vadd.f32 %v208_v8, %v207_v6  ;;  %v203_v11 = vrot.slane %v202_v9, 2  ;;  %p515_p13 = pneg %p514_p8 }
  0x44   : > { %p521_p12 = por %p520_p2, %p519_p11 }
  0x45   : > { %v210_v12 = vrot.slane %v209_v10, 2  ;;  %v204_v13 = vadd.f32 %v203_v11, %v202_v9 }
  0x46   : > { %p522_p3 = pnand %p521_p12, %p515_p13 }
  0x47   : > { %v211_v14 = vadd.f32 %v210_v12, %v209_v10  ;;  %v205_v15 = vrot.slane %v204_v13, 1 }
  0x49   : > { %v212_v16 = vrot.slane %v211_v14, 1  ;;  %v206_v17 = vadd.f32 %v205_v15, %v204_v13 }
  0x4b   : > { %v213_v18 = vadd.f32 %v212_v16, %v211_v14  ;;  %v214_v19 = vmax.f32 %v206_v17, 1e-24 }
  0x4d   : > { %v215_v20 = vmax.f32 %v213_v18, 1e-24  ;;  %452 = vrsqrt.f32 %v214_v19 }
  0x4f   : > { %454 = vrsqrt.f32 %v215_v20 }
  0x5a   : > { %v453_v24 = vpop.eup %452 }
  0x5c   : > { %v455_v25 = vpop.eup %454 }
  0x5d   : > { %v220_v28 = vcombine.low %v453_v24, %v455_v25 }
  0x5f   : > { %v222_v30 = vmul.f32 %v220_v28, %v193_v2 }
  0xb8   : > { %v226_v31 = vpop.permute.xlu0 %225 }
  0xb9   : > { %v233_v32 = vrot.slane %v226_v31, %v232_v29 }
  0xbb   : > { %v235_v33 = vmul.f32 %v233_v32, %v222_v30 }
  0xbd   : > { %v236_v34 = vmul.f32 %v235_v33, %v235_v33 }
  0xbf   : > { %v237_v35 = vmul.f32 %v236_v34, %v235_v33 }
  0xc1   : > { %v238_v36 = vmul.f32 0.044715, %v237_v35 }
  0xc3   : > { %v239_v37 = vadd.f32 %v238_v36, %v235_v33 }
  0xc5   : > { %v240_v38 = vmul.f32 0.7978846, %v239_v37 }
  0xc7   : > { %456 = vtanh.f32 %v240_v38 }
  0xd4   : > { %v457_v39 = vpop.eup %456 }
  0xd5   : > { %v242_v40 = vadd.f32 1.0, %v457_v39 }
  0xd7   : > { %v243_v41 = vmul.f32 0.5, %v242_v40 }
  0xd9   : > { %v244_v42 = vmul.f32 %v243_v41, %v235_v33 }
  0xdb   : > { %245 = vst [vmem:[%s190_s19] sm:$0xff] %v244_v42 }
  0xdc   : > { %525 = shalt.err (!%p522_p3)
}
  0xdd   : > { %s526_s27 = scalar_lea.hbm %s261_s16, 128  ;;  %s530_s29 = scalar_lea.hbm %s785_s2, 256 }
  0xde   : > { %p527_p5 = scmp.ne.s32.totalorder %s261_s16, %s526_s27  ;;  %p531_p4 = scmp.lt.s32.totalorder %s261_s16, %s785_s2 }
  0xdf   : > { %p532_p10 = scmp.lt.s32.totalorder %s530_s29, %s526_s27 }
  0xe0   : > { %p528_p7 = pnand %p527_p5, %p704_p0 }
  0xe1   : > { %p533_p9 = por %p532_p10, %p531_p4 }
  0xe2   : > { %p529_p6 = pneg %p528_p7 }
  0xe4   : > { %p534_p1 = pnand %p533_p9, %p529_p6 }
  0xe6   : > { %537 = shalt.err (!%p534_p1)
}
  0xe7   : > { %382 = dma.vmem_to_hbm [thread:$0]  (%p704_p0), %s264_s21, 128, %s261_s16, %s247_s22  }
  0xe8 PF: > { %s275_s6 = sand.u32 1, %s576_s9   ;;  %p796_p8 = scmp.ne.s32.totalorder %s790_s20, 0 }
  0xe9   : > { %p797_p13 = scmp.ge.s32.totalorder %s596_s14, 2  ;;  %s276_s7 = scalar_lea.sflag [#allocation4], %s275_s6 }
  0xeb   : > { %p393_p11 = pnand %p797_p13, %p796_p8 }
  0xed   : > { %p394_p2 = pneg %p393_p11 }
  0xef   : > { %571 = dma.done.wait (%p394_p2), %s276_s7, 128  }
  0xf0   : > { %573 = vsyncadd (%p394_p2), %s276_s7, 4294967168  ;;  %s19_s14 = sadd.s32 1, %s596_s14   ;;  %s798_s9 = smov %s580_s10 }
  0xf1   : > { %p16_p12 = scmp.ge.s32.totalorder %s19_s14, 4   ;;  %s799_s10 = smov %s584_s11 }
  0xf2   : > { %s800_s11 = smov %s710_s5  ;;  %s801_s12 = smov %s592_s13 }
  0xf3   : > { %s802_s13 = smov %s804_s25  ;;  %18 = sbr.rel (!%p16_p12) target bundleno = 7 (0x7), region = 77 }
  0xf8   :  { %281 = vsyncpa [#allocation3], 1 }
  0xf9   :  { %283 = vsyncpa [#allocation3 + $0x1], 1 }
  0xfa   :  { %284 = vsyncpa [#allocation6], 1 }
  0xfb   :  { %285 = vsyncpa [#allocation4], 1 }
  0xfc   :  { %287 = vsyncpa [#allocation4 + $0x1], 1 }

</bundles_post_ra>
